<compile_context>
chip_gen: v5e
topology: v5e:2x2
jax: 0.10.0
libtpu: 0.0.40
codegen_flags: <defaults>
</compile_context>

<pallas_src>
import jax
import jax.numpy as jnp
from jax.experimental import pallas as pl
from jax.experimental.pallas import tpu as pltpu

_LANE = 512            # wide lane-dense rows -> big contiguous DMA descriptors
_MAX_TILE_ROWS = 1024  # 1024 x 512 f32 = 2 MiB per input tile


def _cdiv(a, b):
    return -(-a // b)


def _round_up(a, m):
    return _cdiv(a, m) * m


def _depth_loss_kernel(pred_ref, target_ref, out_ref):
    # Grid = (split, step). `split` is megacore-parallel; `step` is this
    # split's sequential reduction sweep. out_ref (block (1, 3, 1, LANE))
    # holds this split's lane-vector partial accumulators
    # [sum(pred), sum(target), sum((pred-target)^2)] and stays resident in
    # VMEM across the whole sweep (same block index along the step axis).
    i = pl.program_id(1)

    @pl.when(i == 0)
    def _init():
        out_ref[...] = jnp.zeros_like(out_ref)

    p = pred_ref[...].astype(jnp.float32)      # (TILE_ROWS, LANE)
    t = target_ref[...].astype(jnp.float32)
    d = p - t

    # Reduce over sublanes only (mostly VPU adds, tiny XLU tail) -> (1, LANE).
    # The cross-lane reduce to scalars is deferred to the JAX epilogue.
    out_ref[0, 0] += jnp.sum(p, axis=0, keepdims=True)
    out_ref[0, 1] += jnp.sum(t, axis=0, keepdims=True)
    out_ref[0, 2] += jnp.sum(d * d, axis=0, keepdims=True)


@jax.jit
def depth_loss(pred, target):
    """pred, target: (B, C, H, W). Returns scalar f32 DepthLoss."""
    assert pred.shape == target.shape
    bs = float(pred.shape[0])
    n = pred.size

    p = pred.reshape(-1)
    t = target.reshape(-1)

    # Rows of the flattened (rows, LANE) view; round to 32 sublanes so the
    # block shape is tiling-safe for f32/bf16/int8 inputs alike.
    rows_min = _round_up(_cdiv(n, _LANE), 32)
    if rows_min <= _MAX_TILE_ROWS:
        num_splits = 1                      # tiny input: one tile, one sweep
        tile_rows = rows_min
    else:
        num_splits = 2                      # v7x: 2 TCs each stream half the HBM traffic
        # keep >= ~8 steps per split so zero-padding waste stays <= ~12.5%
        tile_rows = min(_MAX_TILE_ROWS,
                        _round_up(_cdiv(rows_min, 8 * num_splits), 32))
    total_rows = _round_up(rows_min, tile_rows * num_splits)

    pad = total_rows * _LANE - n
    if pad:
        # TODO(synk): for very large non-divisible inputs this pad materializes a
        # copy in HBM; a masked tail pass would avoid it, but zero padding keeps
        # the kernel simple and is numerically exact for this loss.
        p = jnp.pad(p, (0, pad))
        t = jnp.pad(t, (0, pad))
    p2 = p.reshape(total_rows, _LANE)
    t2 = t.reshape(total_rows, _LANE)

    steps_per_split = (total_rows // tile_rows) // num_splits
    grid = (num_splits, steps_per_split)

    in_map = lambda c, i: (c * steps_per_split + i, 0)

    partials = pl.pallas_call(
        _depth_loss_kernel,
        out_shape=jax.ShapeDtypeStruct((num_splits, 3, 1, _LANE), jnp.float32),
        grid_spec=pltpu.PrefetchScalarGridSpec(
            num_scalar_prefetch=0,
            grid=grid,
            in_specs=[
                pl.BlockSpec((tile_rows, _LANE), in_map),
                pl.BlockSpec((tile_rows, _LANE), in_map),
            ],
            out_specs=pl.BlockSpec((1, 3, 1, _LANE), lambda c, i: (c, 0, 0, 0)),
        ),
        compiler_params=pltpu.CompilerParams(
            dimension_semantics=("parallel", "arbitrary"),
            vmem_limit_bytes=32 * 1024 * 1024,
        ),
    )(p2, t2)

    # Tiny epilogue: combine per-split lane-vector partials into the 3 scalars.
    sums = jnp.sum(partials, axis=(0, 2, 3))            # (3,)
    sum_p, sum_t, sum_sq = sums[0], sums[1], sums[2]
    log_loss = jnp.abs(jnp.log(sum_p) - jnp.log(sum_t)) / bs
    mse_loss = sum_sq / float(n)
    return log_loss + mse_loss


def _depth_loss_ref(pred, target):
    bs = pred.shape[0]
    log_loss = jnp.abs(jnp.log(jnp.sum(pred)) - jnp.log(jnp.sum(target))) / bs
    mse_loss = jnp.mean((pred - target) ** 2)
    return log_loss + mse_loss


if __name__ == "__main__":
    key = jax.random.PRNGKey(0)
    k_p, k_t = jax.random.split(key)
    # positive inputs so log(sum(.)) is well defined (depth maps are positive)
    pred = jax.random.uniform(k_p, (2, 4, 16, 16), dtype=jnp.float32,
                              minval=0.1, maxval=5.0)
    target = jax.random.uniform(k_t, (2, 4, 16, 16), dtype=jnp.float32,
                                minval=0.1, maxval=5.0)

    loss = depth_loss(pred, target)
    jax.block_until_ready(loss)

    ref = _depth_loss_ref(pred, target)
    assert jnp.allclose(loss, ref, rtol=1e-5, atol=1e-5), (loss, ref)
    print("KERNEL_OK")
</pallas_src>

<mosaic_0001>
module attributes {stable_mosaic.version = 11 : i64} {
  func.func @_depth_loss_kernel(%arg0: i32, %arg1: i32, %arg2: memref<32x512xf32, #tpu.memory_space<vmem>>, %arg3: memref<32x512xf32, #tpu.memory_space<vmem>>, %arg4: memref<1x3x1x512xf32, #tpu.memory_space<vmem>>) attributes {dimension_semantics = [#tpu.dimension_semantics<parallel>, #tpu.dimension_semantics<arbitrary>], iteration_bounds = array<i64: 1, 1>, scalar_prefetch = 0 : i64, scratch_operands = 0 : i64, tpu.core_type = #tpu.core_type<tc>, window_params = [{transform_indices = @transform_0, window_bounds = array<i64: 32, 512>}, {transform_indices = @transform_1, window_bounds = array<i64: 32, 512>}, {transform_indices = @transform_2, window_bounds = array<i64: 1, 3, 1, 512>}]} {
    %c0_i32 = arith.constant 0 : i32
    %0 = arith.cmpi eq, %arg1, %c0_i32 : i32
    %1 = arith.extui %0 : i1 to i32
    %c0_i32_0 = arith.constant 0 : i32
    %2 = arith.cmpi ne, %1, %c0_i32_0 : i32
    scf.if %2 {
      %cst_28 = arith.constant 0.000000e+00 : f32
      %31 = vector.broadcast %cst_28 : f32 to vector<1x3x1x512xf32>
      %c0_29 = arith.constant 0 : index
      %c0_30 = arith.constant 0 : index
      %c0_31 = arith.constant 0 : index
      %c0_32 = arith.constant 0 : index
      %32 = vector.load %arg4[%c0_29, %c0_30, %c0_31, %c0_32] : memref<1x3x1x512xf32, #tpu.memory_space<vmem>>, vector<1x3x1x512xf32>
      tpu.vector_store %arg4[%c0_29, %c0_30, %c0_31, %c0_32], %31 {strides = array<i32>} : memref<1x3x1x512xf32, #tpu.memory_space<vmem>>, vector<1x3x1x512xf32>,
    } else {
    }
    %c0 = arith.constant 0 : index
    %c0_1 = arith.constant 0 : index
    %3 = vector.load %arg2[%c0, %c0_1] : memref<32x512xf32, #tpu.memory_space<vmem>>, vector<32x512xf32>
    %c0_2 = arith.constant 0 : index
    %c0_3 = arith.constant 0 : index
    %4 = vector.load %arg3[%c0_2, %c0_3] : memref<32x512xf32, #tpu.memory_space<vmem>>, vector<32x512xf32>
    %5 = arith.subf %3, %4 : vector<32x512xf32>
    %c0_4 = arith.constant 0 : index
    %c0_5 = arith.constant 0 : index
    %c0_6 = arith.constant 0 : index
    %c0_7 = arith.constant 0 : index
    %6 = vector.load %arg4[%c0_4, %c0_5, %c0_6, %c0_7] : memref<1x3x1x512xf32, #tpu.memory_space<vmem>>, vector<1x1x1x512xf32>
    %7 = vector.shape_cast %6 : vector<1x1x1x512xf32> to vector<1x512xf32>
    %cst = arith.constant dense<0.000000e+00> : vector<512xf32>
    %8 = vector.multi_reduction <add>, %3, %cst [0] : vector<32x512xf32> to vector<512xf32>
    %9 = vector.shape_cast %8 : vector<512xf32> to vector<1x512xf32>
    %10 = arith.addf %7, %9 : vector<1x512xf32>
    %c0_8 = arith.constant 0 : index
    %c0_9 = arith.constant 0 : index
    %c0_10 = arith.constant 0 : index
    %c0_11 = arith.constant 0 : index
    %11 = vector.load %arg4[%c0_8, %c0_9, %c0_10, %c0_11] : memref<1x3x1x512xf32, #tpu.memory_space<vmem>>, vector<1x1x1x512xf32>
    %12 = vector.shape_cast %11 : vector<1x1x1x512xf32> to vector<1x512xf32>
    %13 = vector.shape_cast %10 : vector<1x512xf32> to vector<1x1x1x512xf32>
    tpu.vector_store %arg4[%c0_8, %c0_9, %c0_10, %c0_11], %13 {strides = array<i32>} : memref<1x3x1x512xf32, #tpu.memory_space<vmem>>, vector<1x1x1x512xf32>,
    %c0_12 = arith.constant 0 : index
    %c1 = arith.constant 1 : index
    %c0_13 = arith.constant 0 : index
    %c0_14 = arith.constant 0 : index
    %14 = vector.load %arg4[%c0_12, %c1, %c0_13, %c0_14] : memref<1x3x1x512xf32, #tpu.memory_space<vmem>>, vector<1x1x1x512xf32>
    %15 = vector.shape_cast %14 : vector<1x1x1x512xf32> to vector<1x512xf32>
    %cst_15 = arith.constant dense<0.000000e+00> : vector<512xf32>
    %16 = vector.multi_reduction <add>, %4, %cst_15 [0] : vector<32x512xf32> to vector<512xf32>
    %17 = vector.shape_cast %16 : vector<512xf32> to vector<1x512xf32>
    %18 = arith.addf %15, %17 : vector<1x512xf32>
    %c0_16 = arith.constant 0 : index
    %c1_17 = arith.constant 1 : index
    %c0_18 = arith.constant 0 : index
    %c0_19 = arith.constant 0 : index
    %19 = vector.load %arg4[%c0_16, %c1_17, %c0_18, %c0_19] : memref<1x3x1x512xf32, #tpu.memory_space<vmem>>, vector<1x1x1x512xf32>
    %20 = vector.shape_cast %19 : vector<1x1x1x512xf32> to vector<1x512xf32>
    %21 = vector.shape_cast %18 : vector<1x512xf32> to vector<1x1x1x512xf32>
    tpu.vector_store %arg4[%c0_16, %c1_17, %c0_18, %c0_19], %21 {strides = array<i32>} : memref<1x3x1x512xf32, #tpu.memory_space<vmem>>, vector<1x1x1x512xf32>,
    %c0_20 = arith.constant 0 : index
    %c2 = arith.constant 2 : index
    %c0_21 = arith.constant 0 : index
    %c0_22 = arith.constant 0 : index
    %22 = vector.load %arg4[%c0_20, %c2, %c0_21, %c0_22] : memref<1x3x1x512xf32, #tpu.memory_space<vmem>>, vector<1x1x1x512xf32>
    %23 = vector.shape_cast %22 : vector<1x1x1x512xf32> to vector<1x512xf32>
    %24 = arith.mulf %5, %5 : vector<32x512xf32>
    %cst_23 = arith.constant dense<0.000000e+00> : vector<512xf32>
    %25 = vector.multi_reduction <add>, %24, %cst_23 [0] : vector<32x512xf32> to vector<512xf32>
    %26 = vector.shape_cast %25 : vector<512xf32> to vector<1x512xf32>
    %27 = arith.addf %23, %26 : vector<1x512xf32>
    %c0_24 = arith.constant 0 : index
    %c2_25 = arith.constant 2 : index
    %c0_26 = arith.constant 0 : index
    %c0_27 = arith.constant 0 : index
    %28 = vector.load %arg4[%c0_24, %c2_25, %c0_26, %c0_27] : memref<1x3x1x512xf32, #tpu.memory_space<vmem>>, vector<1x1x1x512xf32>
    %29 = vector.shape_cast %28 : vector<1x1x1x512xf32> to vector<1x512xf32>
    %30 = vector.shape_cast %27 : vector<1x512xf32> to vector<1x1x1x512xf32>
    tpu.vector_store %arg4[%c0_24, %c2_25, %c0_26, %c0_27], %30 {strides = array<i32>} : memref<1x3x1x512xf32, #tpu.memory_space<vmem>>, vector<1x1x1x512xf32>,
    return
  }
  func.func @transform_0(%arg0: i32, %arg1: i32) -> (i32, i32) {
    %c1_i32 = arith.constant 1 : i32
    %0 = arith.muli %arg0, %c1_i32 : i32
    %1 = arith.addi %0, %arg1 : i32
    %c0_i32 = arith.constant 0 : i32
    %c0_i32_0 = arith.constant 0 : i32
    return %1, %c0_i32 : i32, i32
  }
  func.func @transform_1(%arg0: i32, %arg1: i32) -> (i32, i32) {
    %c1_i32 = arith.constant 1 : i32
    %0 = arith.muli %arg0, %c1_i32 : i32
    %1 = arith.addi %0, %arg1 : i32
    %c0_i32 = arith.constant 0 : i32
    %c0_i32_0 = arith.constant 0 : i32
    return %1, %c0_i32 : i32, i32
  }
  func.func @transform_2(%arg0: i32, %arg1: i32) -> (i32, i32, i32, i32) {
    %c0_i32 = arith.constant 0 : i32
    %c0_i32_0 = arith.constant 0 : i32
    %c0_i32_1 = arith.constant 0 : i32
    %c0_i32_2 = arith.constant 0 : i32
    return %arg0, %c0_i32, %c0_i32_0, %c0_i32_1 : i32, i32, i32, i32
  }
}

</mosaic_0001>

<bundles_post_ra>
// kernel: depth_loss.1
= control target key start
LH: loop header
LB: loop body
LE: loop exit
PB: predicated region body
PF: predicated region fallthrough
CT: control target
= control target key end

     0   :  { %v65_v0 = vlaneseq  ;;  %v316_v8 = vmov 0.0   ;;  %vm164_vm1 = vcmask 1040384   ;;  %vm166_vm2 = vcmask 1042434   ;;  %s544_s2 = inlined_call_operand.vmem [shape: f32[1,3,1,512], index: 2, kind: output, shape index: {}]   ;;  %s545_s0 = inlined_call_operand.vmem [shape: f32[32,512], index: 0, kind: input, shape index: {}]   ;;  %s546_s1 = inlined_call_operand.vmem [shape: f32[32,512], index: 1, kind: input, shape index: {}]  }
   0x1   :  { %v72_v1 = vld [vmem:[%s545_s0] sm:$0xff]  ;;  %v73_v2 = vld [vmem:[%s545_s0 + $0x8] sm:$0xff]  ;;  %v74_v3 = vld [vmem:[%s545_s0 + $0x10] sm:$0xff]  ;;  %vm168_vm3 = vcmask 1041408  }
   0x2   :  { %vm341_vm0 = vcmp.lt.s32.totalorder %v65_v0, 512  ;;  %v75_v5 = vld [vmem:[%s545_s0 + $0x18] sm:$0xff]  ;;  %v76_v6 = vld [vmem:[%s545_s0 + $0x20] sm:$0xff]  ;;  %v77_v7 = vld [vmem:[%s545_s0 + $0x28] sm:$0xff] }
   0x3   :  { %69 = vst.msk [vmem:[%s544_s2] sm:$0xf] %vm341_vm0, %v316_v8  ;;  %v78_v9 = vld [vmem:[%s545_s0 + $0x30] sm:$0xff]  ;;  %v79_v10 = vld [vmem:[%s545_s0 + $0x38] sm:$0xff]  ;;  %v80_v11 = vld [vmem:[%s545_s0 + $0x40] sm:$0xff]  ;;  %v121_v12 = vadd.f32 %v76_v6, %v72_v1  ;;  %v130_v13 = vadd.f32 %v77_v7, %v73_v2 }
   0x4   :  { %70 = vst.msk [vmem:[%s544_s2 + $0x4] sm:$0xf] %vm341_vm0, %v316_v8  ;;  %v81_v14 = vld [vmem:[%s545_s0 + $0x48] sm:$0xff]  ;;  %v82_v15 = vld [vmem:[%s545_s0 + $0x50] sm:$0xff]  ;;  %v83_v16 = vld [vmem:[%s545_s0 + $0x58] sm:$0xff]  ;;  %v139_v17 = vadd.f32 %v78_v9, %v74_v3  ;;  %v148_v18 = vadd.f32 %v79_v10, %v75_v5 }
   0x5   :  { %71 = vst.msk [vmem:[%s544_s2 + $0x8] sm:$0xf] %vm341_vm0, %v316_v8  ;;  %v84_v19 = vld [vmem:[%s545_s0 + $0x60] sm:$0xff]  ;;  %v85_v20 = vld [vmem:[%s545_s0 + $0x68] sm:$0xff]  ;;  %v86_v21 = vld [vmem:[%s545_s0 + $0x70] sm:$0xff]  ;;  %v122_v22 = vadd.f32 %v121_v12, %v80_v11  ;;  %v131_v23 = vadd.f32 %v130_v13, %v81_v14 }
   0x6   :  { %v87_v24 = vld [vmem:[%s545_s0 + $0x78] sm:$0xff]  ;;  %v140_v25 = vadd.f32 %v139_v17, %v82_v15  ;;  %v149_v26 = vadd.f32 %v148_v18, %v83_v16  ;;  %v88_v27 = vld [vmem:[%s546_s1] sm:$0xff]  ;;  %v89_v28 = vld [vmem:[%s546_s1 + $0x8] sm:$0xff] }
   0x7   :  { %v123_v29 = vadd.f32 %v122_v22, %v84_v19  ;;  %v132_v30 = vadd.f32 %v131_v23, %v85_v20  ;;  %v90_v31 = vld [vmem:[%s546_s1 + $0x10] sm:$0xff]  ;;  %v91_v32 = vld [vmem:[%s546_s1 + $0x18] sm:$0xff]  ;;  %v92_v33 = vld [vmem:[%s546_s1 + $0x20] sm:$0xff]  ;;  %v414_v34 = vsub.f32 %v72_v1, %v88_v27  ;;  %v416_v35 = vsub.f32 %v73_v2, %v89_v28 }
   0x8   :  { %v141_v36 = vadd.f32 %v140_v25, %v86_v21  ;;  %v150_v37 = vadd.f32 %v149_v26, %v87_v24  ;;  %v93_v38 = vld [vmem:[%s546_s1 + $0x28] sm:$0xff]  ;;  %v94_v39 = vld [vmem:[%s546_s1 + $0x30] sm:$0xff]  ;;  %v95_v40 = vld [vmem:[%s546_s1 + $0x38] sm:$0xff]  ;;  %v427_v41 = vsub.f32 %v74_v3, %v90_v31  ;;  %v429_v42 = vsub.f32 %v75_v5, %v91_v32 }
   0x9   :  { %v124_v43 = vrot.slane %v123_v29, 4  ;;  %v133_v44 = vrot.slane %v132_v30, 4  ;;  %v96_v45 = vld [vmem:[%s546_s1 + $0x40] sm:$0xff]  ;;  %v97_v46 = vld [vmem:[%s546_s1 + $0x48] sm:$0xff]  ;;  %v98_v47 = vld [vmem:[%s546_s1 + $0x50] sm:$0xff]  ;;  %v440_v48 = vsub.f32 %v76_v6, %v92_v33  ;;  %v442_v49 = vsub.f32 %v77_v7, %v93_v38 }
   0xa   :  { %v142_v50 = vrot.slane %v141_v36, 4  ;;  %v151_v51 = vrot.slane %v150_v37, 4  ;;  %v99_v52 = vld [vmem:[%s546_s1 + $0x58] sm:$0xff]  ;;  %v100_v53 = vld [vmem:[%s546_s1 + $0x60] sm:$0xff]  ;;  %v450_v54 = vsub.f32 %v78_v9, %v94_v39  ;;  %v452_v55 = vsub.f32 %v79_v10, %v95_v40  ;;  %v101_v58 = vld [vmem:[%s546_s1 + $0x68] sm:$0xff] }
   0xb   :  { %v125_v56 = vadd.f32 %v124_v43, %v123_v29  ;;  %v134_v57 = vadd.f32 %v133_v44, %v132_v30  ;;  %v102_v59 = vld [vmem:[%s546_s1 + $0x70] sm:$0xff]  ;;  %v103_v60 = vld [vmem:[%s546_s1 + $0x78] sm:$0xff]  ;;  %v463_v61 = vsub.f32 %v80_v11, %v96_v45  ;;  %v465_v62 = vsub.f32 %v81_v14, %v97_v46 }
   0xc   :  { %v143_v63 = vadd.f32 %v142_v50, %v141_v36  ;;  %v152_v0 = vadd.f32 %v151_v51, %v150_v37  ;;  %v467_v1 = vsub.f32 %v82_v15, %v98_v47  ;;  %v469_v2 = vsub.f32 %v83_v16, %v99_v52 }
   0xd   :  { %v126_v3 = vrot.slane %v125_v56, 2  ;;  %v135_v5 = vrot.slane %v134_v57, 2  ;;  %v471_v6 = vsub.f32 %v84_v19, %v100_v53  ;;  %v473_v7 = vsub.f32 %v85_v20, %v101_v58 }
   0xe   :  { %v144_v8 = vrot.slane %v143_v63, 2  ;;  %v153_v9 = vrot.slane %v152_v0, 2  ;;  %v475_v10 = vsub.f32 %v86_v21, %v102_v59  ;;  %v477_v11 = vsub.f32 %v87_v24, %v103_v60 }
   0xf   :  { %v127_v12 = vadd.f32 %v126_v3, %v125_v56  ;;  %v136_v13 = vadd.f32 %v135_v5, %v134_v57  ;;  %v179_v14 = vadd.f32 %v92_v33, %v88_v27  ;;  %v188_v15 = vadd.f32 %v93_v38, %v89_v28 }
  0x10   :  { %v145_v16 = vadd.f32 %v144_v8, %v143_v63  ;;  %v154_v17 = vadd.f32 %v153_v9, %v152_v0  ;;  %v197_v18 = vadd.f32 %v94_v39, %v90_v31  ;;  %v206_v22 = vadd.f32 %v95_v40, %v91_v32 }
  0x11   :  { %v128_v23 = vrot.slane %v127_v12, 1  ;;  %v137_v19 = vrot.slane %v136_v13, 1  ;;  %v180_v25 = vadd.f32 %v179_v14, %v96_v45  ;;  %v189_v20 = vadd.f32 %v188_v15, %v97_v46 }
  0x12   :  { %v146_v26 = vrot.slane %v145_v16, 1  ;;  %v155_v29 = vrot.slane %v154_v17, 1  ;;  %v198_v30 = vadd.f32 %v197_v18, %v98_v47  ;;  %v207_v36 = vadd.f32 %v206_v22, %v99_v52  ;;  %v120_v47 = vld [vmem:[%s544_s2] sm:$0xf] }
  0x13   :  { %v129_v21 = vadd.f32 %v128_v23, %v127_v12  ;;  %v138_v37 = vadd.f32 %v137_v19, %v136_v13  ;;  %v181_v24 = vadd.f32 %v180_v25, %v100_v53  ;;  %v190_v43 = vadd.f32 %v189_v20, %v101_v58 }
  0x14   :  { %v147_v44 = vadd.f32 %v146_v26, %v145_v16  ;;  %v156_v50 = vadd.f32 %v155_v29, %v154_v17  ;;  %v199_v27 = vadd.f32 %v198_v30, %v102_v59  ;;  %v208_v28 = vadd.f32 %v207_v36, %v103_v60 }
  0x15   :  { %v161_v33 = vrot.slane %v138_v37, 7  ;;  %v182_v38 = vrot.slane %v181_v24, 4  ;;  %v191_v31 = vrot.slane %v190_v43, 4  ;;  %v230_v32 = vmul.f32 %v414_v34, %v414_v34 }
  0x16   :  { %v162_v39 = vrot.slane %v147_v44, 6  ;;  %v163_v40 = vrot.slane %v156_v50, 5  ;;  %v200_v45 = vrot.slane %v199_v27, 4  ;;  %v209_v46 = vrot.slane %v208_v28, 4 }
  0x17   :  { %v165_v51 = vsel %vm164_vm1, %v129_v21, %v161_v33  ;;  %v183_v52 = vadd.f32 %v182_v38, %v181_v24  ;;  %v192_v53 = vadd.f32 %v191_v31, %v190_v43  ;;  %v231_v56 = vmul.f32 %v416_v35, %v416_v35 }
  0x18   :  { %v167_v57 = vsel %vm166_vm2, %v162_v39, %v163_v40  ;;  %v201_v58 = vadd.f32 %v200_v45, %v199_v27  ;;  %v210_v59 = vadd.f32 %v209_v46, %v208_v28  ;;  %v232_v34 = vmul.f32 %v427_v41, %v427_v41 }
  0x19   :  { %v169_v60 = vsel %vm168_vm3, %v165_v51, %v167_v57  ;;  %v184_v63 = vrot.slane %v183_v52, 2  ;;  %v193_v0 = vrot.slane %v192_v53, 2  ;;  %v233_v3 = vmul.f32 %v429_v42, %v429_v42 }
  0x1a   :  { %v171_v5 = vadd.f32 %v169_v60, %v120_v47  ;;  %v202_v8 = vrot.slane %v201_v58, 2  ;;  %v211_v9 = vrot.slane %v210_v59, 2  ;;  %v234_v35 = vmul.f32 %v440_v48, %v440_v48 }
  0x1b   :  { %v185_v12 = vadd.f32 %v184_v63, %v183_v52  ;;  %v194_v13 = vadd.f32 %v193_v0, %v192_v53  ;;  %v235_v14 = vmul.f32 %v442_v49, %v442_v49  ;;  %v236_v41 = vmul.f32 %v450_v54, %v450_v54 }
  0x1c   :  { %176 = vst.msk [vmem:[%s544_s2] sm:$0xf] %vm341_vm0, %v171_v5  ;;  %v203_v42 = vadd.f32 %v202_v8, %v201_v58  ;;  %v212_v15 = vadd.f32 %v211_v9, %v210_v59  ;;  %v237_v16 = vmul.f32 %v452_v55, %v452_v55  ;;  %v238_v48 = vmul.f32 %v463_v61, %v463_v61 }
  0x1d   :  { %v186_v17 = vrot.slane %v185_v12, 1  ;;  %v195_v18 = vrot.slane %v194_v13, 1  ;;  %v239_v49 = vmul.f32 %v465_v62, %v465_v62  ;;  %v240_v54 = vmul.f32 %v467_v1, %v467_v1 }
  0x1e   :  { %v204_v22 = vrot.slane %v203_v42, 1  ;;  %v213_v23 = vrot.slane %v212_v15, 1  ;;  %v241_v19 = vmul.f32 %v469_v2, %v469_v2  ;;  %v242_v25 = vmul.f32 %v471_v6, %v471_v6 }
  0x1f   :  { %v187_v55 = vadd.f32 %v186_v17, %v185_v12  ;;  %v196_v20 = vadd.f32 %v195_v18, %v194_v13  ;;  %v243_v61 = vmul.f32 %v473_v7, %v473_v7  ;;  %v244_v26 = vmul.f32 %v475_v10, %v475_v10  ;;  %v311_v7 = vld [vmem:[%s544_s2 + $0x4] sm:$0xf] }
  0x20   :  { %v205_v62 = vadd.f32 %v204_v22, %v203_v42  ;;  %v214_v29 = vadd.f32 %v213_v23, %v212_v15  ;;  %v245_v1 = vmul.f32 %v477_v11, %v477_v11  ;;  %v246_v30 = vadd.f32 %v234_v35, %v230_v32 }
  0x21   :  { %v219_v36 = vrot.slane %v196_v20, 7  ;;  %v255_v21 = vadd.f32 %v235_v14, %v231_v56  ;;  %v264_v2 = vadd.f32 %v236_v41, %v232_v34  ;;  %v273_v37 = vadd.f32 %v237_v16, %v233_v3 }
  0x22   :  { %v220_v24 = vrot.slane %v205_v62, 6  ;;  %v221_v6 = vrot.slane %v214_v29, 5  ;;  %v247_v43 = vadd.f32 %v246_v30, %v238_v48  ;;  %v313_v48 = vld [vmem:[%s544_s2 + $0x8] sm:$0xf] }
  0x23   :  { %v222_v44 = vsel %vm164_vm1, %v187_v55, %v219_v36  ;;  %v256_v10 = vadd.f32 %v255_v21, %v239_v49  ;;  %v265_v50 = vadd.f32 %v264_v2, %v240_v54  ;;  %v274_v27 = vadd.f32 %v273_v37, %v241_v19 }
  0x24   :  { %v223_v28 = vsel %vm166_vm2, %v220_v24, %v221_v6  ;;  %v248_v11 = vadd.f32 %v247_v43, %v242_v25 }
  0x25   :  { %v224_v33 = vsel %vm168_vm3, %v222_v44, %v223_v28  ;;  %v257_v38 = vadd.f32 %v256_v10, %v243_v61  ;;  %v266_v31 = vadd.f32 %v265_v50, %v244_v26  ;;  %v275_v32 = vadd.f32 %v274_v27, %v245_v1 }
  0x26   :  { %v226_v39 = vadd.f32 %v311_v7, %v224_v33  ;;  %v249_v40 = vrot.slane %v248_v11, 4 }
  0x27   :  { %v258_v45 = vrot.slane %v257_v38, 4  ;;  %v267_v46 = vrot.slane %v266_v31, 4  ;;  %v276_v47 = vrot.slane %v275_v32, 4 }
  0x28   :  { %312 = vst.msk [vmem:[%s544_s2 + $0x4] sm:$0xf] %vm341_vm0, %v226_v39  ;;  %v250_v51 = vadd.f32 %v249_v40, %v248_v11 }
  0x29   :  { %v259_v52 = vadd.f32 %v258_v45, %v257_v38  ;;  %v268_v53 = vadd.f32 %v267_v46, %v266_v31  ;;  %v277_v56 = vadd.f32 %v276_v47, %v275_v32 }
  0x2a   :  { %v251_v57 = vrot.slane %v250_v51, 2 }
  0x2b   :  { %v260_v58 = vrot.slane %v259_v52, 2  ;;  %v269_v59 = vrot.slane %v268_v53, 2  ;;  %v278_v34 = vrot.slane %v277_v56, 2 }
  0x2c   :  { %v252_v60 = vadd.f32 %v251_v57, %v250_v51 }
  0x2d   :  { %v261_v63 = vadd.f32 %v260_v58, %v259_v52  ;;  %v270_v0 = vadd.f32 %v269_v59, %v268_v53  ;;  %v279_v3 = vadd.f32 %v278_v34, %v277_v56 }
  0x2e   :  { %v253_v5 = vrot.slane %v252_v60, 1 }
  0x2f   :  { %v262_v8 = vrot.slane %v261_v63, 1  ;;  %v271_v9 = vrot.slane %v270_v0, 1  ;;  %v280_v35 = vrot.slane %v279_v3, 1 }
  0x30   :  { %v254_v12 = vadd.f32 %v253_v5, %v252_v60 }
  0x31   :  { %v263_v13 = vadd.f32 %v262_v8, %v261_v63  ;;  %v272_v14 = vadd.f32 %v271_v9, %v270_v0  ;;  %v281_v41 = vadd.f32 %v280_v35, %v279_v3 }
  0x33   :  { %v286_v42 = vrot.slane %v263_v13, 7  ;;  %v287_v15 = vrot.slane %v272_v14, 6  ;;  %v288_v16 = vrot.slane %v281_v41, 5 }
  0x35   :  { %v289_v17 = vsel %vm164_vm1, %v254_v12, %v286_v42  ;;  %v290_v18 = vsel %vm166_vm2, %v287_v15, %v288_v16 }
  0x36   :  { %v291_v49 = vsel %vm168_vm3, %v289_v17, %v290_v18 }
  0x37   :  { %v293_v54 = vadd.f32 %v313_v48, %v291_v49 }
  0x39   :  { %314 = vst.msk [vmem:[%s544_s2 + $0x8] sm:$0xf] %vm341_vm0, %v293_v54 }

</bundles_post_ra>
